<compile_context>
chip_gen: v7x
topology: tpu7x:2x2x1
jax: 0.10.0
libtpu: 0.0.40
codegen_flags: <defaults>
</compile_context>

<pallas_src>
import functools

import jax
import jax.numpy as jnp
from jax.experimental import pallas as pl
from jax.experimental.pallas import tpu as pltpu


def _round_up(n, m):
    return ((n + m - 1) // m) * m


def _pick_dim_tile(dim, cap):
    """Largest multiple of 128 that divides `dim` and is <= cap (dim % 128 == 0)."""
    cap = max(128, min(cap, dim))
    for cand in range(cap - cap % 128, 127, -128):
        if dim % cand == 0:
            return cand
    return 128


def _pick_batch_tile(batch, cap):
    """Largest multiple of 8 that divides `batch` and is <= cap (batch % 8 == 0)."""
    cap = max(8, min(cap, batch))
    for cand in range(cap - cap % 8, 7, -8):
        if batch % cand == 0:
            return cand
    return 8


def _dyn_kernel_direct(delta_ref, x_ref, phi_ref, b_ref, o_ref, *, compute_dtype):
    """Single-K-step path: no accumulator scratch, no init/finalize."""
    z = jnp.dot(x_ref[...].astype(compute_dtype),
                phi_ref[...].astype(compute_dtype),
                preferred_element_type=jnp.float32) + b_ref[...]
    o_ref[...] = (jnp.tanh(z) * delta_ref[0]).astype(o_ref.dtype)


def _dyn_kernel_acc(delta_ref, x_ref, phi_ref, b_ref, o_ref, acc_ref, *, compute_dtype):
    """Multi-K-step path: f32 VMEM accumulator with pl.when init / finalize."""
    k = pl.program_id(2)

    @pl.when(k == 0)
    def _():
        acc_ref[...] = jnp.zeros_like(acc_ref)

    acc_ref[...] += jnp.dot(x_ref[...].astype(compute_dtype),
                            phi_ref[...].astype(compute_dtype),
                            preferred_element_type=jnp.float32)

    @pl.when(k == pl.num_programs(2) - 1)
    def _():
        z = acc_ref[...] + b_ref[...]                       # (1,tn) -> (tm,tn), f32
        o_ref[...] = (jnp.tanh(z) * delta_ref[0]).astype(o_ref.dtype)


def dyn_forward(t, x, phi, b, delta, *,
                compute_dtype=jnp.bfloat16,
                out_dtype=None,
                max_tm=256, max_tn=1024, max_tk=1024,
                single_block_max_bytes=2 << 20):
    """forward(t, x) = tanh(x @ Phi + b) * delta  (f is autonomous; t unused)."""
    del t  # autonomous f: t never enters the kernel (no false SMEM dependency)
    B, H = x.shape
    assert phi.shape == (H, H) and b.shape == (H,)

    out_dtype = x.dtype if out_dtype is None else jnp.dtype(out_dtype)
    x_item = jnp.dtype(x.dtype).itemsize
    p_item = jnp.dtype(phi.dtype).itemsize
    o_item = jnp.dtype(out_dtype).itemsize

    d_arr = jnp.asarray([delta], jnp.float32)
    b2 = b.reshape(1, H).astype(jnp.float32)

    cost = pl.CostEstimate(
        flops=2 * B * H * H,
        transcendentals=B * H,
        bytes_accessed=B * H * x_item + H * H * p_item + H * 4 + B * H * o_item,
    )

    # ---- Tiny problem: single block, no padding, no K grid, no scratch. ----
    total_bytes = B * H * x_item + H * H * p_item + H * 4 + B * H * o_item
    if total_bytes <= single_block_max_bytes:
        return pl.pallas_call(
            functools.partial(_dyn_kernel_direct, compute_dtype=compute_dtype),
            out_shape=jax.ShapeDtypeStruct((B, H), out_dtype),
            grid_spec=pltpu.PrefetchScalarGridSpec(
                num_scalar_prefetch=0,
                grid=(1,),
                in_specs=[
                    pl.BlockSpec(memory_space=pltpu.MemorySpace.SMEM),  # delta
                    pl.BlockSpec((B, H), lambda i: (0, 0)),             # x (full)
                    pl.BlockSpec((H, H), lambda i: (0, 0)),             # Phi (full)
                    pl.BlockSpec((1, H), lambda i: (0, 0)),             # b (full)
                ],
                out_specs=pl.BlockSpec((B, H), lambda i: (0, 0)),
            ),
            compiler_params=pltpu.CompilerParams(
                dimension_semantics=("arbitrary",)),
            cost_estimate=cost,
        )(d_arr, x, phi, b2)

    # ---- Tiled path. --------------------------------------------------------
    aligned = (H % 128 == 0) and (B % 8 == 0)
    if aligned:
        # Fast path: no padded copies, no wrapper-side cast (bf16 cast happens
        # in the kernel right before the MXU dot) -> minimal HBM traffic.
        Bp, Hp = B, H
        xp, phip, bp = x, phi, b2
        tm = _pick_batch_tile(B, max_tm)
    else:
        # Ragged shapes: K padding must be zero for the reduction; M/N padding
        # garbage is sliced off below.
        Hp = _round_up(H, 128)
        tm = min(max_tm, _round_up(B, 16))
        tm = max(8, tm - tm % 8)
        Bp = _round_up(B, tm)
        xp = x if (Bp == B and Hp == H) else (
            jnp.zeros((Bp, Hp), x.dtype).at[:B, :H].set(x))
        phip = phi if Hp == H else (
            jnp.zeros((Hp, Hp), phi.dtype).at[:H, :H].set(phi))
        bp = b2 if Hp == H else (
            jnp.zeros((1, Hp), jnp.float32).at[0, :H].set(b.astype(jnp.float32)))

    tn = _pick_dim_tile(Hp, max_tn)
    tk = _pick_dim_tile(Hp, max_tk)
    ni, nj, nk = Bp // tm, Hp // tn, Hp // tk

    # Megacore ordering: lead with the axis that has more tiles.  When B is
    # small this makes the Phi-column axis the leading "parallel" axis so the
    # 2 TensorCores split Phi columns instead of duplicating Phi HBM traffic.
    if ni >= nj:
        grid = (ni, nj, nk)
        x_map = lambda i, j, k: (i, k)
        p_map = lambda i, j, k: (k, j)
        b_map = lambda i, j, k: (0, j)
        o_map = lambda i, j, k: (i, j)
    else:
        grid = (nj, ni, nk)
        x_map = lambda j, i, k: (i, k)
        p_map = lambda j, i, k: (k, j)
        b_map = lambda j, i, k: (0, j)
        o_map = lambda j, i, k: (i, j)

    if nk == 1:
        kernel = functools.partial(_dyn_kernel_direct, compute_dtype=compute_dtype)
        scratch = []
    else:
        kernel = functools.partial(_dyn_kernel_acc, compute_dtype=compute_dtype)
        scratch = [pltpu.VMEM((tm, tn), jnp.float32)]

    # Double-buffered tiles (x, Phi, b, out) + f32 accumulator; explicit limit
    # (headroom on every generation incl. v7x's 64 MiB physical VMEM).
    tile_bytes = 2 * (tm * tk * x_item + tk * tn * p_item + tn * 4 + tm * tn * o_item)
    if nk > 1:
        tile_bytes += tm * tn * 4
    vmem_limit = int(min(48 << 20, max(16 << 20, int(tile_bytes * 1.5))))

    out = pl.pallas_call(
        kernel,
        out_shape=jax.ShapeDtypeStruct((Bp, Hp), out_dtype),
        grid_spec=pltpu.PrefetchScalarGridSpec(
            num_scalar_prefetch=0,
            grid=grid,
            in_specs=[
                pl.BlockSpec(memory_space=pltpu.MemorySpace.SMEM),  # delta
                pl.BlockSpec((tm, tk), x_map),                      # x tile
                pl.BlockSpec((tk, tn), p_map),                      # Phi tile
                pl.BlockSpec((1, tn), b_map),                       # b tile (f32)
            ],
            out_specs=pl.BlockSpec((tm, tn), o_map),
            scratch_shapes=scratch,
        ),
        compiler_params=pltpu.CompilerParams(
            dimension_semantics=("parallel", "parallel", "arbitrary"),
            vmem_limit_bytes=vmem_limit),
        cost_estimate=cost,
    )(d_arr, xp, phip, bp)

    # TODO(synk): when driven from an ODE-integration loop, keep Phi resident
    # across steps (fused step-loop grid axis whose Phi index_map ignores the
    # step, or a cross-pallas_call prefetch) instead of re-fetching Phi from
    # HBM every step.
    if Bp != B or Hp != H:
        out = out[:B, :H]
    return out


if __name__ == "__main__":
    key = jax.random.PRNGKey(0)

    def run_case(B, H, atol=1e-2, rtol=5e-2, **kw):
        kx, kphi, kb = jax.random.split(jax.random.fold_in(key, B * 1000 + H), 3)
        x = jax.random.normal(kx, (B, H), jnp.float32)
        Phi = jax.random.normal(kphi, (H, H), jnp.float32) / jnp.sqrt(H)
        b = jax.random.normal(kb, (H,), jnp.float32) * 0.1
        delta, t = 0.1, 0.0

        out = jax.block_until_ready(dyn_forward(t, x, Phi, b, delta, **kw))

        ref = jnp.tanh(x @ Phi + b[None, :]) * delta
        assert out.shape == (B, H), out.shape
        err = float(jnp.max(jnp.abs(out - ref)))
        assert jnp.allclose(out, ref, atol=atol, rtol=rtol), err

    # 1) Tiny module-sized case (B=8, hidden=32) -> single-block fast path
    #    (no padding, no K grid, no scratch).
    run_case(8, 32)
    # 2) Aligned no-copy tiled path: multi-K accumulator, j-major (Phi-column)
    #    megacore ordering (ni=1 < nj=2), in-kernel bf16 cast.
    run_case(16, 256, single_block_max_bytes=0, max_tn=128, max_tk=128)
    # 3) Ragged shapes -> padded tiled path (accumulator init/finalize plus
    #    padding slice-off).
    run_case(20, 160, single_block_max_bytes=0, max_tm=16, max_tn=128, max_tk=128)
    # 4) Aligned single-K tiled path (no accumulator scratch), f32 compute.
    run_case(32, 128, single_block_max_bytes=0, compute_dtype=jnp.float32)

    print("KERNEL_OK")
</pallas_src>

<mosaic_0001>
module attributes {stable_mosaic.version = 11 : i64} {
  func.func @_dyn_kernel_direct(%arg0: i32, %arg1: memref<1xf32, #tpu.memory_space<smem>>, %arg2: memref<8x32xf32, #tpu.memory_space<vmem>>, %arg3: memref<32x32xf32, #tpu.memory_space<vmem>>, %arg4: memref<1x32xf32, #tpu.memory_space<vmem>>, %arg5: memref<8x32xf32, #tpu.memory_space<vmem>>) attributes {dimension_semantics = [#tpu.dimension_semantics<arbitrary>], iteration_bounds = array<i64: 1>, scalar_prefetch = 0 : i64, scratch_operands = 0 : i64, tpu.core_type = #tpu.core_type<tc>, window_params = [{transform_indices = @transform_0, window_bounds = array<i64: 1>}, {pipeline_mode = #tpu.pipeline_mode<synchronous>, transform_indices = @transform_1, window_bounds = array<i64: 8, 32>}, {pipeline_mode = #tpu.pipeline_mode<synchronous>, transform_indices = @transform_2, window_bounds = array<i64: 32, 32>}, {pipeline_mode = #tpu.pipeline_mode<synchronous>, transform_indices = @transform_3, window_bounds = array<i64: 1, 32>}, {pipeline_mode = #tpu.pipeline_mode<synchronous>, transform_indices = @transform_4, window_bounds = array<i64: 8, 32>}]} {
    %c0 = arith.constant 0 : index
    %c0_0 = arith.constant 0 : index
    %0 = vector.load %arg2[%c0, %c0_0] : memref<8x32xf32, #tpu.memory_space<vmem>>, vector<8x32xf32>
    %1 = arith.truncf %0 : vector<8x32xf32> to vector<8x32xbf16>
    %c0_1 = arith.constant 0 : index
    %c0_2 = arith.constant 0 : index
    %2 = vector.load %arg3[%c0_1, %c0_2] : memref<32x32xf32, #tpu.memory_space<vmem>>, vector<32x32xf32>
    %3 = arith.truncf %2 : vector<32x32xf32> to vector<32x32xbf16>
    %cst = arith.constant dense<0.000000e+00> : vector<8x32xf32>
    %4 = tpu.matmul %1, %3, %cst {dimension_numbers = #tpu.dot_dimension_numbers<[1], [0], [0], [1], [0, 0, 1, 1], [], []>} : vector<8x32xbf16>, vector<32x32xbf16>, vector<8x32xf32> -> vector<8x32xf32>
    %c0_3 = arith.constant 0 : index
    %c0_4 = arith.constant 0 : index
    %5 = vector.load %arg4[%c0_3, %c0_4] : memref<1x32xf32, #tpu.memory_space<vmem>>, vector<1x32xf32>
    %6 = vector.broadcast %5 : vector<1x32xf32> to vector<8x32xf32>
    %7 = arith.addf %4, %6 : vector<8x32xf32>
    %8 = math.tanh %7 : vector<8x32xf32>
    %c0_5 = arith.constant 0 : index
    %9 = memref.load %arg1[%c0_5] : memref<1xf32, #tpu.memory_space<smem>>
    %10 = vector.broadcast %9 : f32 to vector<8x32xf32>
    %11 = arith.mulf %8, %10 : vector<8x32xf32>
    %c0_6 = arith.constant 0 : index
    %c0_7 = arith.constant 0 : index
    %12 = vector.load %arg5[%c0_6, %c0_7] : memref<8x32xf32, #tpu.memory_space<vmem>>, vector<8x32xf32>
    tpu.vector_store %arg5[%c0_6, %c0_7], %11 {strides = array<i32>} : memref<8x32xf32, #tpu.memory_space<vmem>>, vector<8x32xf32>,
    return
  }
  func.func @transform_0(%arg0: i32) -> i32 {
    %c0_i32 = arith.constant 0 : i32
    %c0_i32_0 = arith.constant 0 : i32
    return %c0_i32 : i32
  }
  func.func @transform_1(%arg0: i32) -> (i32, i32) {
    %c0_i32 = arith.constant 0 : i32
    %c0_i32_0 = arith.constant 0 : i32
    %c0_i32_1 = arith.constant 0 : i32
    return %c0_i32, %c0_i32_0 : i32, i32
  }
  func.func @transform_2(%arg0: i32) -> (i32, i32) {
    %c0_i32 = arith.constant 0 : i32
    %c0_i32_0 = arith.constant 0 : i32
    %c0_i32_1 = arith.constant 0 : i32
    return %c0_i32, %c0_i32_0 : i32, i32
  }
  func.func @transform_3(%arg0: i32) -> (i32, i32) {
    %c0_i32 = arith.constant 0 : i32
    %c0_i32_0 = arith.constant 0 : i32
    %c0_i32_1 = arith.constant 0 : i32
    return %c0_i32, %c0_i32_0 : i32, i32
  }
  func.func @transform_4(%arg0: i32) -> (i32, i32) {
    %c0_i32 = arith.constant 0 : i32
    %c0_i32_0 = arith.constant 0 : i32
    %c0_i32_1 = arith.constant 0 : i32
    return %c0_i32, %c0_i32_0 : i32, i32
  }
}

</mosaic_0001>

<bundles_post_ra>
// kernel: tpu_custom_call.1
= control target key start
LH: loop header
LB: loop body
LE: loop exit
PB: predicated region body
PF: predicated region fallthrough
CT: control target
= control target key end

     0   :  { %10 = vsyncpa [#allocation4], 0  ;;  %s301_s0 = inlined_call_operand.<no memory space> [shape: f32[1], index: 0, kind: input, shape index: {}]   ;;  %s302_s1 = inlined_call_operand.hbm [shape: f32[8,32], index: 1, kind: input, shape index: {}]   ;;  %s303_s2 = inlined_call_operand.hbm [shape: f32[32,32], index: 2, kind: input, shape index: {}]   ;;  %s304_s3 = inlined_call_operand.vmem [shape: f32[1,32], index: 3, kind: input, shape index: {}]   ;;  %s305_s4 = inlined_call_operand.hbm [shape: f32[8,32], index: 4, kind: output, shape index: {}]  }
   0x1   :  { %11 = vsyncpa [#allocation7], 0 }
   0x2   :  { %12 = vsyncpa [#allocation5], 0  ;;  %s220_s15 = smov [#allocation3]   ;;  %s221_s17 = smov [#allocation6]  }
   0x3   :  { %s21_s16 = sshll.u32 %s220_s15, 4  ;;  %s30_s18 = sshll.u32 %s221_s17, 4  ;;  %s22_s16 = int_to_ptr.vmem [resolvable:$true] %s21_s16  ;;  %s252_s18 = int_to_ptr.vmem [resolvable:$true] %s30_s18 }
   0x4   :  { %s148_s21 = scalar_lea.hbm %s302_s1, 128 }
   0x5   :  { %p149_p0 = scmp.ne.s32.totalorder %s302_s1, %s148_s21  ;;  %p152_p1 = scmp.lt.u32.totalorder %s148_s21, %s302_s1 }
   0x7   :  { %p154_p2 = pnand %p152_p1, %p149_p0 }
   0x9   :  { %157 = shalt.err (!%p154_p2)
}
   0xa   :  { %s158_s26 = scalar_lea.vmem %s22_s16, 128  ;;  %p163_p4 = scmp.lt.s32.totalorder %s22_s16, %s22_s16 }
   0xb   :  { %p159_p3 = scmp.ne.s32.totalorder %s22_s16, %s158_s26  ;;  %p164_p5 = scmp.lt.s32.totalorder %s158_s26, %s158_s26 }
   0xd   :  { %p165_p6 = por %p164_p5, %p163_p4 }
   0xf   :  { %p166_p7 = pnand %p165_p6, %p159_p3 }
  0x11   :  { %169 = shalt.err (!%p166_p7)
}
  0x12   :  { %24 = dma.hbm_to_vmem [thread:$0]  %s302_s1, 128, %s22_s16, [#allocation4]  }
  0x13   :  { %s170_s5 = scalar_lea.hbm %s303_s2, 512 }
  0x14   :  { %p171_p8 = scmp.ne.s32.totalorder %s303_s2, %s170_s5  ;;  %p174_p9 = scmp.lt.u32.totalorder %s170_s5, %s303_s2 }
  0x16   :  { %p176_p10 = pnand %p174_p9, %p171_p8 }
  0x18   :  { %179 = shalt.err (!%p176_p10)
}
  0x19   :  { %s180_s10 = scalar_lea.vmem %s252_s18, 512  ;;  %p185_p12 = scmp.lt.s32.totalorder %s252_s18, %s252_s18 }
  0x1a   :  { %p181_p11 = scmp.ne.s32.totalorder %s252_s18, %s180_s10  ;;  %p186_p13 = scmp.lt.s32.totalorder %s180_s10, %s180_s10 }
  0x1c   :  { %p187_p0 = por %p186_p13, %p185_p12 }
  0x1e   :  { %p188_p1 = pnand %p187_p0, %p181_p11 }
  0x20   :  { %191 = shalt.err (!%p188_p1)
}
  0x21   :  { %s222_s1 = smov 128   ;;  %s223_s11 = smov 8  }
  0x22   :  { %36 = dma.hbm_to_vmem [thread:$0]  %s303_s2, 512, %s252_s18, [#allocation7], %s222_s1, %s222_s1, %s223_s11  }
  0x23   :  { %214 = dma.done.wait [#allocation4], 128  }
  0x24   :  { %215 = vsyncadd [#allocation4], 4294967168 }
  0x25   :  { %216 = dma.done.wait [#allocation7], 512  }
  0x26   :  { %217 = vsyncadd [#allocation7], 4294966784  ;;  %v224_v0 = vmov 0.0   ;;  %vm225_vm0 = vmmov 0   ;;  %v48_v1 = vld [vmem:[#allocation6] sm:$0xff]  ;;  %v49_v2 = vld [vmem:[#allocation6 + $0x8] sm:$0xff]  ;;  %v107_v15 = vstv %s301_s0 }
  0x27   :  { %131 = vmatprep.subr.bf16.mxu0 %v224_v0  ;;  %135 = vmatprep.mubr.msk.bf16.mxu0 %vm225_vm0, %v224_v0  ;;  %v50_v3 = vld [vmem:[#allocation6 + $0x10] sm:$0xff]  ;;  %v52_v4 = vpack.c.bf16 %v49_v2, %v48_v1  ;;  %v51_v5 = vld [vmem:[#allocation6 + $0x18] sm:$0xff]  ;;  %vm61_vm1 = vcmask 261120   ;;  %s226_s17 = smov [#allocation8]  }
  0x28   :  { %v53_v6 = vpack.c.bf16 %v51_v5, %v50_v3  ;;  %v46_v7 = vld [vmem:[#allocation3] sm:$0xff]  ;;  %s116_s18 = sshll.u32 %s226_s17, 4  ;;  %s117_s18 = int_to_ptr.vmem [resolvable:$true] %s116_s18 }
  0x29   :  { %132 = vmatpush3.bf16.msra.mxu0 %v52_v4  ;;  %v47_v8 = vpack.c.bf16 %v46_v7, %v46_v7  ;;  %v126_v9 = vld [vmem:[%s304_s3] ss:$0 sm:$0xff]  ;;  %s192_s19 = scalar_lea.vmem %s117_s18, 128  ;;  %p197_p3 = scmp.lt.s32.totalorder %s117_s18, %s117_s18 }
  0x2a   :  { %133 = vmatprep.subr.bf16.mxu0 %v224_v0  ;;  %p193_p2 = scmp.ne.s32.totalorder %s117_s18, %s192_s19  ;;  %p198_p4 = scmp.lt.s32.totalorder %s192_s19, %s192_s19 }
  0x2c   :  { %p199_p5 = por %p198_p4, %p197_p3 }
  0x2d   :  { %134 = vmatpush3.bf16.msra.mxu0 %v53_v6 }
  0x2e   :  { %p200_p6 = pnand %p199_p5, %p193_p2 }
  0x30   :  { %136 = vmatmul.mubr.msk.bf16.vlgmr.msra.gmra.mrb[0].mxu0 %vm61_vm1, %v47_v8 }
 0x103   :  { %v99_v10 = vpop.f32.mrb[0].mxu0 }
 0x104   :  { %v100_v11 = vadd.f32 %v126_v9, %v99_v10  ;;  %v137_v12 = vpop.f32.mrb[1].mxu0 }
 0x105   :  { %v102_v13 = vpop.f32.mrb[2].mxu0 }
 0x106   :  { %146 = vtanh.f32 %v100_v11  ;;  %v138_v14 = vpop.f32.mrb[3].mxu0 }
 0x110   :  { %v147_v16 = vpop.eup %146 }
 0x111   :  { %v108_v17 = vmul.f32 %v147_v16, %v107_v15 }
 0x113   :  { %109 = vst.msk [vmem:[#allocation8] sm:$0xff] %vm61_vm1, %v108_v17 }
 0x114   :  { %203 = shalt.err (!%p200_p6)
}
 0x115   :  { %s204_s21 = scalar_lea.hbm %s305_s4, 128 }
 0x116   :  { %p205_p7 = scmp.ne.s32.totalorder %s305_s4, %s204_s21  ;;  %p208_p8 = scmp.lt.u32.totalorder %s204_s21, %s305_s4 }
 0x118   :  { %p210_p9 = pnand %p208_p8, %p205_p7 }
 0x11a   :  { %213 = shalt.err (!%p210_p9)
}
 0x11b   :  { %119 = dma.vmem_to_hbm [thread:$0]  %s117_s18, 128, %s305_s4, [#allocation5]  }
 0x11c   :  { %218 = dma.done.wait [#allocation5], 128  }
 0x11d   :  { %219 = vsyncadd [#allocation5], 4294967168 }
 0x11e   :  { %123 = vsyncpa [#allocation4], 1 }
 0x11f   :  { %124 = vsyncpa [#allocation7], 1 }
 0x120   :  { %125 = vsyncpa [#allocation5], 1 }

</bundles_post_ra>
